<compile_context>
chip_gen: v7x
topology: tpu7x:2x2x1
jax: 0.10.0
libtpu: 0.0.40
codegen_flags: <defaults>
</compile_context>

<pallas_src>
import jax
import jax.numpy as jnp
from jax.experimental import pallas as pl
from jax.experimental.pallas import tpu as pltpu


_MAX_BLOCK_BYTES = 8 * 1024 * 1024    # per-buffer block budget (~8 MiB)
_VMEM_LIMIT_BYTES = 48 * 1024 * 1024  # explicit scoped-VMEM limit (fits v7x 64 MiB)


def _copy_kernel(x_ref, o_ref):
    # Pure tile copy: identical block shapes for in/out; bound only by vld/vst/DMA.
    o_ref[...] = x_ref[...]


def _copy_prefix_kernel(x_ref, o_ref):
    # Full-T path: input block spans T, output block spans T_out = T - 1.
    o_ref[...] = x_ref[:, : o_ref.shape[-1]]


def _round_down(v: int, m: int) -> int:
    return (v // m) * m


def _round_up(v: int, m: int) -> int:
    return -(-v // m) * m


def wav2vec2_same_pad(x: jax.Array, num_conv_pos_embeddings: int) -> jax.Array:
    """Pallas implementation of Wav2Vec2SamePadLayer.forward for (B, C, T) input."""
    num_pad_remove = 1 if num_conv_pos_embeddings % 2 == 0 else 0
    if num_pad_remove == 0:
        # Identity: no kernel launch, no HBM round trip.
        return x

    B, C, T = x.shape
    T_out = T - num_pad_remove
    if T_out <= 0:
        # Degenerate (T == 1): empty time axis, nothing to copy.
        return x[:, :, :0]

    R = B * C
    x2 = x.reshape(R, T)  # free collapse of contiguous leading dims -> (rows, time)

    elem = jnp.dtype(x.dtype).itemsize
    sublane = max(8, 32 // elem)  # dtype-aware sublane packing: 8 f32, 16 bf16, 32 i8

    def _choose_rows(cols_in_block: int) -> int:
        """Row-tile height: sublane multiple within the block budget, capped so the
        parallel row axis keeps >= ~8 blocks (v7x: 2 TCs x ~4 pipeline steps)."""
        if R <= sublane:
            return R  # full row extent — always layout-legal
        budget = max(sublane,
                     _round_down(_MAX_BLOCK_BYTES // (cols_in_block * elem), sublane))
        parallel = max(sublane, _round_up(-(-R // 8), sublane))
        rows = min(budget, parallel, _round_down(R, sublane))
        return max(sublane, rows)

    full_t_block_fits = (min(R, sublane) * T * elem) <= _MAX_BLOCK_BYTES

    if full_t_block_fits:
        # Typical regime: whole time axis in one block; single (parallel) row grid.
        # Full-extent last dims satisfy the (8,128) rule on both specs; the final
        # ragged row block (if R % rows_tile != 0) is masked by Pallas.
        rows_tile = _choose_rows(T)
        grid = (pl.cdiv(R, rows_tile),)
        out2 = pl.pallas_call(
            _copy_prefix_kernel,
            out_shape=jax.ShapeDtypeStruct((R, T_out), x.dtype),
            grid=grid,
            in_specs=[pl.BlockSpec((rows_tile, T), lambda i: (i, 0))],
            out_specs=pl.BlockSpec((rows_tile, T_out), lambda i: (i, 0)),
            compiler_params=pltpu.CompilerParams(
                dimension_semantics=("parallel",),
                vmem_limit_bytes=_VMEM_LIMIT_BYTES,
            ),
        )(x2)
    else:
        # Huge-T fallback: tile time too. Lane-dense 128-multiple t_tile; only the
        # final ragged time tile takes masked stores. (This branch only triggers
        # when even a sublane-tall full-T block exceeds ~8 MiB, so T_out >= 128.)
        rows_tile = sublane if R > sublane else R
        t_budget = _round_down(_MAX_BLOCK_BYTES // (max(rows_tile, 1) * elem), 128)
        t_tile = max(128, min(t_budget, _round_down(T_out, 128)))
        grid = (pl.cdiv(R, rows_tile), pl.cdiv(T_out, t_tile))
        out2 = pl.pallas_call(
            _copy_kernel,
            out_shape=jax.ShapeDtypeStruct((R, T_out), x.dtype),
            grid=grid,
            in_specs=[pl.BlockSpec((rows_tile, t_tile), lambda i, j: (i, j))],
            out_specs=pl.BlockSpec((rows_tile, t_tile), lambda i, j: (i, j)),
            compiler_params=pltpu.CompilerParams(
                dimension_semantics=("parallel", "parallel"),
                vmem_limit_bytes=_VMEM_LIMIT_BYTES,
            ),
        )(x2)

    # TODO(synk): for the absolute roofline a direct HBM->HBM strided DMA
    # (memory_space=pl.ANY + make_async_copy) would skip VMEM staging entirely;
    # kept on the BlockSpec path for robustness across chip generations.
    return out2.reshape(B, C, T_out)


if __name__ == "__main__":
    key = jax.random.PRNGKey(0)
    k_small, k_mid, k_bf16 = jax.random.split(key, 3)

    # Even -> num_pad_remove = 1 (drop last time step).
    num_conv_pos_embeddings = 128

    # Small case (B, C, T) consistent with the module's NCW layout.
    B, C, T = 2, 4, 16
    x = jax.random.normal(k_small, (B, C, T), dtype=jnp.float32)
    y = wav2vec2_same_pad(x, num_conv_pos_embeddings)
    jax.block_until_ready(y)
    assert y.shape == (B, C, T - 1), y.shape
    assert jnp.array_equal(y, x[:, :, :-1]), "mismatch vs reference slice (small)"

    # Moderate case: R not a power-of-two multiple of rows_tile, odd-ish T.
    B2, C2, T2 = 2, 16, 259
    x_mid = jax.random.normal(k_mid, (B2, C2, T2), dtype=jnp.float32)
    y_mid = wav2vec2_same_pad(x_mid, num_conv_pos_embeddings)
    jax.block_until_ready(y_mid)
    assert y_mid.shape == (B2, C2, T2 - 1), y_mid.shape
    assert jnp.array_equal(y_mid, x_mid[:, :, :-1]), "mismatch vs reference slice (mid)"

    # bf16 case: exercises the dtype-aware sublane multiple.
    x_bf16 = jax.random.normal(k_bf16, (2, 12, 37), dtype=jnp.bfloat16)
    y_bf16 = wav2vec2_same_pad(x_bf16, num_conv_pos_embeddings)
    jax.block_until_ready(y_bf16)
    assert y_bf16.shape == (2, 12, 36), y_bf16.shape
    assert jnp.array_equal(y_bf16, x_bf16[:, :, :-1]), "mismatch vs reference slice (bf16)"

    # Odd case: identity short-circuit (no kernel launch, returns x as-is).
    y_odd = wav2vec2_same_pad(x, num_conv_pos_embeddings + 1)
    jax.block_until_ready(y_odd)
    assert y_odd.shape == (B, C, T)
    assert jnp.array_equal(y_odd, x)

    print("KERNEL_OK")
</pallas_src>

<mosaic_0001>
module attributes {stable_mosaic.version = 11 : i64} {
  func.func @_copy_prefix_kernel(%arg0: i32, %arg1: memref<8x16xf32, #tpu.memory_space<vmem>>, %arg2: memref<8x15xf32, #tpu.memory_space<vmem>>) attributes {dimension_semantics = [#tpu.dimension_semantics<parallel>], iteration_bounds = array<i64: 1>, scalar_prefetch = 0 : i64, scratch_operands = 0 : i64, tpu.core_type = #tpu.core_type<tc>, window_params = [{transform_indices = @transform_0, window_bounds = array<i64: 8, 16>}, {transform_indices = @transform_1, window_bounds = array<i64: 8, 15>}]} {
    %c0 = arith.constant 0 : index
    %c0_0 = arith.constant 0 : index
    %0 = vector.load %arg1[%c0, %c0_0] : memref<8x16xf32, #tpu.memory_space<vmem>>, vector<8x15xf32>
    %c0_1 = arith.constant 0 : index
    %c0_2 = arith.constant 0 : index
    %1 = vector.load %arg2[%c0_1, %c0_2] : memref<8x15xf32, #tpu.memory_space<vmem>>, vector<8x15xf32>
    tpu.vector_store %arg2[%c0_1, %c0_2], %0 {strides = array<i32>} : memref<8x15xf32, #tpu.memory_space<vmem>>, vector<8x15xf32>,
    return
  }
  func.func @transform_0(%arg0: i32) -> (i32, i32) {
    %c0_i32 = arith.constant 0 : i32
    %c0_i32_0 = arith.constant 0 : i32
    return %arg0, %c0_i32 : i32, i32
  }
  func.func @transform_1(%arg0: i32) -> (i32, i32) {
    %c0_i32 = arith.constant 0 : i32
    %c0_i32_0 = arith.constant 0 : i32
    return %arg0, %c0_i32 : i32, i32
  }
}

</mosaic_0001>

<bundles_post_ra>
// kernel: tpu_custom_call.1
= control target key start
LH: loop header
LB: loop body
LE: loop exit
PB: predicated region body
PF: predicated region fallthrough
CT: control target
= control target key end

     0   :  { %6 = vsyncpa [#allocation3], 0  ;;  %s125_s0 = inlined_call_operand.hbm [shape: f32[8,16], index: 0, kind: input, shape index: {}]   ;;  %s126_s1 = inlined_call_operand.hbm [shape: f32[8,15], index: 1, kind: output, shape index: {}]  }
   0x1   :  { %7 = vsyncpa [#allocation4], 0  ;;  %s89_s6 = smov [#allocation2]   ;;  %s41_s10 = scalar_lea.hbm %s125_s0, 128 }
   0x2   :  { %s14_s7 = sshll.u32 %s89_s6, 4  ;;  %p42_p0 = scmp.ne.s32.totalorder %s125_s0, %s41_s10  ;;  %s15_s7 = int_to_ptr.vmem [resolvable:$true] %s14_s7 }
   0x3   :  { %p45_p1 = scmp.lt.u32.totalorder %s41_s10, %s125_s0 }
   0x5   :  { %p47_p2 = pnand %p45_p1, %p42_p0 }
   0x7   :  { %50 = shalt.err (!%p47_p2)
}
   0x8   :  { %s51_s15 = scalar_lea.vmem %s15_s7, 128  ;;  %p56_p4 = scmp.lt.s32.totalorder %s15_s7, %s15_s7 }
   0x9   :  { %p52_p3 = scmp.ne.s32.totalorder %s15_s7, %s51_s15  ;;  %p57_p5 = scmp.lt.s32.totalorder %s51_s15, %s51_s15 }
   0xb   :  { %p58_p6 = por %p57_p5, %p56_p4 }
   0xd   :  { %p59_p7 = pnand %p58_p6, %p52_p3 }
   0xf   :  { %62 = shalt.err (!%p59_p7)
}
  0x10   :  { %17 = dma.hbm_to_vmem [thread:$0]  %s125_s0, 128, %s15_s7, [#allocation3]  }
  0x11   :  { %85 = dma.done.wait [#allocation3], 128  }
  0x12   :  { %86 = vsyncadd [#allocation3], 4294967168  ;;  %s90_s18 = smov [#allocation5]   ;;  %vm22_vm0 = vcmask 121856   ;;  %v21_v0 = vld [vmem:[#allocation2] sm:$0xff] }
  0x13   :  { %s30_s19 = sshll.u32 %s90_s18, 4  ;;  %23 = vst.msk [vmem:[#allocation5] sm:$0xff] %vm22_vm0, %v21_v0  ;;  %s31_s19 = int_to_ptr.vmem [resolvable:$true] %s30_s19 }
  0x14   :  { %s63_s20 = scalar_lea.vmem %s31_s19, 128  ;;  %p68_p9 = scmp.lt.s32.totalorder %s31_s19, %s31_s19 }
  0x15   :  { %p64_p8 = scmp.ne.s32.totalorder %s31_s19, %s63_s20  ;;  %p69_p10 = scmp.lt.s32.totalorder %s63_s20, %s63_s20 }
  0x17   :  { %p70_p11 = por %p69_p10, %p68_p9 }
  0x19   :  { %p71_p12 = pnand %p70_p11, %p64_p8 }
  0x1b   :  { %74 = shalt.err (!%p71_p12)
}
  0x1c   :  { %s75_s23 = scalar_lea.hbm %s126_s1, 128 }
  0x1d   :  { %p76_p13 = scmp.ne.s32.totalorder %s126_s1, %s75_s23  ;;  %p79_p0 = scmp.lt.u32.totalorder %s75_s23, %s126_s1 }
  0x1f   :  { %p81_p1 = pnand %p79_p0, %p76_p13 }
  0x21   :  { %84 = shalt.err (!%p81_p1)
}
  0x22   :  { %33 = dma.vmem_to_hbm [thread:$0]  %s31_s19, 128, %s126_s1, [#allocation4]  }
  0x23   :  { %87 = dma.done.wait [#allocation4], 128  }
  0x24   :  { %88 = vsyncadd [#allocation4], 4294967168 }
  0x25   :  { %37 = vsyncpa [#allocation3], 1 }
  0x26   :  { %38 = vsyncpa [#allocation4], 1 }

</bundles_post_ra>
